<compile_context>
chip_gen: v7x
topology: tpu7x:2x2x1
jax: 0.10.0
libtpu: 0.0.40
codegen_flags: <defaults>
</compile_context>

<pallas_src>
import functools
import math

import jax
import jax.numpy as jnp
from jax import lax
from jax.experimental import pallas as pl
from jax.experimental.pallas import tpu as pltpu

ALPHA = max(0.1, 0.001)   # module: self.alpha = max(alpha, 0.001)

_MIB = 1024 * 1024


def _round_up(x, m):
    return ((x + m - 1) // m) * m


def _cdiv(a, b):
    return -(-a // b)


def _device_kind():
    try:
        return (jax.devices()[0].device_kind or "").lower()
    except Exception:
        return ""


def _num_tensorcores(kind):
    # Prefer an explicit attribute if the runtime exposes one; otherwise use the
    # device-kind heuristic (v7x has 2 TCs/chip, v5e/v6e have 1).
    try:
        dev = jax.devices()[0]
        for attr in ("num_cores", "core_count"):
            v = getattr(dev, attr, None)
            if isinstance(v, int) and v > 1:
                return v
    except Exception:
        pass
    if "v7" in kind:
        return 2
    return 1


def _vmem_capacity_bytes(kind):
    try:
        info = pltpu.get_tpu_info()
        cap = getattr(info, "vmem_capacity_bytes", None)
        if isinstance(cap, int) and cap > 0:
            return cap
    except Exception:
        pass
    return 64 * _MIB if "v7" in kind else 128 * _MIB


def _loss_kernel(logits_ref, tgt_ref, out_ref, acc_ref, *,
                 n_rows, alpha, steps, tm):
    s = pl.program_id(0)          # slice (megacore-parallel)
    i = pl.program_id(1)          # step within slice (reduction axis)

    @pl.when(i == 0)
    def _():
        acc_ref[...] = jnp.zeros_like(acc_ref)

    x = logits_ref[...].astype(jnp.float32)          # (tm, C)
    tgt = tgt_ref[...]                               # (tm, 1) int32
    c = x.shape[-1]

    # one-hot(target) built via lane iota compare
    onehot = lax.broadcasted_iota(jnp.int32, (tm, c), 1) == tgt

    # softmax pieces (only row reductions of exp are needed)
    m = jnp.max(x, axis=-1, keepdims=True)
    ex = jnp.exp(x - m)
    denom = jnp.sum(ex, axis=-1, keepdims=True)                        # (tm, 1)
    num = jnp.sum(jnp.where(onehot, ex, 0.0), axis=-1, keepdims=True)  # (tm, 1)

    inv_denom = pl.reciprocal(denom, approx=False)   # exact: beta_sum feeds a threshold
    beta_sum = num * inv_denom                       # sum(pred over one-hot mask)
    non_beta_sum = (denom - num) * inv_denom         # sum(pred over complement)

    one_m_a = 1.0 - alpha
    log_1ma = math.log(one_m_a)
    log_a = math.log(alpha)

    # Closed-form KL: target_credal = w * pred / S  =>  log(t) - log(pred) = log(w) - log(S)
    # so sum_c kl = (1-a)*(log(1-a)-log(beta_sum)) + a*(log(a)-log(non_beta_sum)),
    # each term zeroed where its denominator is zero (matches F.kl_div's t<=0 -> 0).
    log_bs = jnp.log(jnp.where(beta_sum > 0.0, beta_sum, 1.0))
    log_nbs = jnp.log(jnp.where(non_beta_sum > 0.0, non_beta_sum, 1.0))
    divergence = (jnp.where(beta_sum > 0.0, one_m_a * (log_1ma - log_bs), 0.0)
                  + jnp.where(non_beta_sum > 0.0, alpha * (log_a - log_nbs), 0.0))

    result = jnp.where(beta_sum >= one_m_a, 0.0, divergence)          # (tm, 1)

    # Zero rows that are out of range.  row_ids uses the UNCLAMPED block index, so
    # grid steps whose index_map was clamped to re-read the last block contribute
    # nothing, and each real row is counted exactly once.  jnp.where is a select,
    # so garbage/NaN values from the partial boundary block never reach acc_ref.
    row_base = (s * steps + i) * tm
    row_ids = row_base + lax.broadcasted_iota(jnp.int32, (tm, 1), 0)
    result = jnp.where(row_ids < n_rows, result, 0.0)

    acc_ref[...] = acc_ref[...] + jnp.sum(result, axis=(0, 1), keepdims=True)

    @pl.when(i == steps - 1)
    def _():
        # lane-dense write of the per-slice partial sum (value replicated across lanes)
        out_ref[...] = jnp.broadcast_to(acc_ref[...].reshape(1, 1, 1), (1, 1, 128))


def beta_complete_ambiguation_loss(logits, target, *, alpha=ALPHA,
                                   num_slices=None, block_bytes=None,
                                   warmup=True, adaptive_beta=False):
    """logits: (N, C) float (f32/bf16), target: (N,) int. Returns scalar mean loss.

    Only the default warmup path is implemented (beta_mask = one_hot(target))."""
    if adaptive_beta or not warmup:
        # TODO(synk): adaptive_beta / non-warmup beta_mask = (pred > beta) | target.
        raise NotImplementedError("Only the warmup/default branch is implemented.")

    n, c = logits.shape
    kind = _device_kind()

    if num_slices is None:
        num_slices = _num_tensorcores(kind)        # 2 on v7x, 1 on v5e/v6e
    num_slices = max(1, min(num_slices, _cdiv(n, 8)))

    # --- generation-aware VMEM budget ---
    phys_vmem = _vmem_capacity_bytes(kind)
    vmem_limit = min(phys_vmem - 16 * _MIB, 64 * _MIB)   # v5e/v6e: 64 MiB, v7x: 48 MiB
    budget = max(4 * _MIB, vmem_limit - 8 * _MIB)        # headroom for Mosaic scratch

    # --- DMA block size target: ~4 MiB of logits per block (~2 MiB on v5e) ---
    if block_bytes is None:
        block_bytes = 2 * _MIB if "v5" in kind else 4 * _MIB
    in_item = jnp.dtype(logits.dtype).itemsize

    # VMEM bytes per tile row: 2 logits buffers + 2 lane-padded (tm,1)->(tm,128) i32
    # target buffers + ~4 full-tile f32 temporaries (x, ex, onehot, masked ex).
    per_row_vmem = 2 * c * in_item + 2 * 128 * 4 + 4 * c * 4

    rows_per_slice = _cdiv(n, num_slices)
    tm_dma = max(8, block_bytes // (c * in_item))
    tm_vmem = max(8, budget // per_row_vmem)
    tm_eff = max(8, (min(tm_dma, tm_vmem, _round_up(rows_per_slice, 8)) // 8) * 8)

    steps = _cdiv(rows_per_slice, tm_eff)
    num_blocks = _cdiv(n, tm_eff)
    last_block = num_blocks - 1

    # No padding of logits: clamp the block index so trailing / partial grid steps
    # re-read an in-bounds window; in-kernel row masking zeroes their contribution.
    def row_block_map(s, i):
        return (jnp.minimum(s * steps + i, last_block), 0)

    tgt = target.astype(jnp.int32).reshape(n, 1)

    kernel = functools.partial(_loss_kernel, n_rows=n, alpha=float(alpha),
                               steps=steps, tm=tm_eff)
    partials = pl.pallas_call(
        kernel,
        out_shape=jax.ShapeDtypeStruct((num_slices, 1, 128), jnp.float32),
        grid_spec=pltpu.PrefetchScalarGridSpec(
            num_scalar_prefetch=0,
            grid=(num_slices, steps),
            in_specs=[
                pl.BlockSpec((tm_eff, c), row_block_map),
                pl.BlockSpec((tm_eff, 1), row_block_map),
            ],
            out_specs=pl.BlockSpec((1, 1, 128), lambda s, i: (s, 0, 0)),
            scratch_shapes=[pltpu.VMEM((1, 1), jnp.float32)],
        ),
        compiler_params=pltpu.CompilerParams(
            dimension_semantics=("parallel", "arbitrary"),
            vmem_limit_bytes=int(vmem_limit),
        ),
    )(logits, tgt)
    return jnp.sum(partials[:, 0, 0]) / jnp.float32(n)


def _reference(logits, target, alpha=ALPHA):
    # Pure-JAX reference mirroring the PyTorch forward (warmup path).
    pred_log = jax.nn.log_softmax(logits, axis=-1)
    pred = jax.nn.softmax(logits, axis=-1)
    onehot = jax.nn.one_hot(target, logits.shape[-1], dtype=jnp.float32)
    beta_mask = onehot > 0
    mask_sum = beta_mask.sum(-1, keepdims=True)
    beta_mask = jnp.where(mask_sum > 1, True, beta_mask)
    bm = beta_mask.astype(jnp.float32)
    beta_sum = (bm * pred).sum(-1, keepdims=True)
    non_beta_sum = ((1.0 - bm) * pred).sum(-1, keepdims=True)
    bsp = jnp.where(beta_sum == 0, 0.0, pred / jnp.where(beta_sum == 0, 1.0, beta_sum))
    nbsp = jnp.where(non_beta_sum == 0, 0.0,
                     pred / jnp.where(non_beta_sum == 0, 1.0, non_beta_sum))
    tc = jnp.where(beta_mask, (1.0 - alpha) * bsp, alpha * nbsp)
    kl = jnp.where(tc > 0, tc * (jnp.log(jnp.where(tc > 0, tc, 1.0)) - pred_log), 0.0)
    div = kl.sum(-1)
    is_in = beta_sum[:, 0] >= 1.0 - alpha
    return jnp.where(is_in, 0.0, div).mean()


if __name__ == "__main__":
    key = jax.random.PRNGKey(0)
    # (13, 128): ragged batch -> exercises clamped index_map + row masking (no pad).
    # (16, 128): aligned batch.  (29, 256) bf16: ragged + wider C + bf16 input path.
    cases = [(13, 128, jnp.float32), (16, 128, jnp.float32), (29, 256, jnp.bfloat16)]
    for (N, C, dt) in cases:
        k1, k2 = jax.random.split(jax.random.fold_in(key, N * 1000 + C))
        logits = (jax.random.normal(k1, (N, C), dtype=jnp.float32) * 2.0).astype(dt)
        target = jax.random.randint(k2, (N,), 0, C, dtype=jnp.int32)

        loss = jax.block_until_ready(beta_complete_ambiguation_loss(logits, target))
        ref = jax.block_until_ready(_reference(logits.astype(jnp.float32), target))
        assert jnp.allclose(loss, ref, atol=1e-4, rtol=1e-4), (N, C, dt, loss, ref)
    print("KERNEL_OK")
</pallas_src>

<mosaic_0001>
module attributes {stable_mosaic.version = 11 : i64} {
  func.func @_loss_kernel(%arg0: i32, %arg1: i32, %arg2: memref<16x128xf32, #tpu.memory_space<vmem>>, %arg3: memref<16x1xi32, #tpu.memory_space<vmem>>, %arg4: memref<1x1x128xf32, #tpu.memory_space<vmem>>, %arg5: memref<1x1xf32, #tpu.memory_space<vmem>>) attributes {dimension_semantics = [#tpu.dimension_semantics<parallel>, #tpu.dimension_semantics<arbitrary>], iteration_bounds = array<i64: 1, 1>, scalar_prefetch = 0 : i64, scratch_operands = 1 : i64, tpu.core_type = #tpu.core_type<tc>, window_params = [{transform_indices = @transform_0, window_bounds = array<i64: 16, 128>}, {transform_indices = @transform_1, window_bounds = array<i64: 16, 1>}, {transform_indices = @transform_2, window_bounds = array<i64: 1, 1, 128>}]} {
    %c0_i32 = arith.constant 0 : i32
    %0 = arith.cmpi eq, %arg1, %c0_i32 : i32
    %1 = arith.extui %0 : i1 to i32
    %c0_i32_0 = arith.constant 0 : i32
    %2 = arith.cmpi ne, %1, %c0_i32_0 : i32
    scf.if %2 {
      %cst_29 = arith.constant 0.000000e+00 : f32
      %75 = vector.broadcast %cst_29 : f32 to vector<1x1xf32>
      %c0_30 = arith.constant 0 : index
      %c0_31 = arith.constant 0 : index
      %76 = vector.load %arg5[%c0_30, %c0_31] : memref<1x1xf32, #tpu.memory_space<vmem>>, vector<1x1xf32>
      tpu.vector_store %arg5[%c0_30, %c0_31], %75 {strides = array<i32>} : memref<1x1xf32, #tpu.memory_space<vmem>>, vector<1x1xf32>,
    } else {
    }
    %c0 = arith.constant 0 : index
    %c0_1 = arith.constant 0 : index
    %3 = vector.load %arg2[%c0, %c0_1] : memref<16x128xf32, #tpu.memory_space<vmem>>, vector<16x128xf32>
    %c0_2 = arith.constant 0 : index
    %c0_3 = arith.constant 0 : index
    %4 = vector.load %arg3[%c0_2, %c0_3] : memref<16x1xi32, #tpu.memory_space<vmem>>, vector<16x1xi32>
    %5 = tpu.iota {dimensions = array<i32: 1>} : vector<16x128xi32>
    %6 = vector.broadcast %4 : vector<16x1xi32> to vector<16x128xi32>
    %7 = arith.cmpi eq, %5, %6 : vector<16x128xi32>
    %cst = arith.constant dense<0xFF800000> : vector<16xf32>
    %8 = vector.multi_reduction <maximumf>, %3, %cst [1] : vector<16x128xf32> to vector<16xf32>
    %9 = vector.shape_cast %8 : vector<16xf32> to vector<16x1xf32>
    %10 = vector.broadcast %9 : vector<16x1xf32> to vector<16x128xf32>
    %11 = arith.subf %3, %10 : vector<16x128xf32>
    %12 = math.exp %11 : vector<16x128xf32>
    %cst_4 = arith.constant dense<0.000000e+00> : vector<16xf32>
    %13 = vector.multi_reduction <add>, %12, %cst_4 [1] : vector<16x128xf32> to vector<16xf32>
    %14 = vector.shape_cast %13 : vector<16xf32> to vector<16x1xf32>
    %cst_5 = arith.constant 0.000000e+00 : f32
    %15 = vector.broadcast %cst_5 : f32 to vector<16x128xf32>
    %16 = arith.select %7, %12, %15 : vector<16x128xi1>, vector<16x128xf32>
    %cst_6 = arith.constant dense<0.000000e+00> : vector<16xf32>
    %17 = vector.multi_reduction <add>, %16, %cst_6 [1] : vector<16x128xf32> to vector<16xf32>
    %18 = vector.shape_cast %17 : vector<16xf32> to vector<16x1xf32>
    %19 = tpu.reciprocal %14 : vector<16x1xf32> -> vector<16x1xf32>
    %20 = arith.mulf %18, %19 : vector<16x1xf32>
    %21 = arith.subf %14, %18 : vector<16x1xf32>
    %22 = arith.mulf %21, %19 : vector<16x1xf32>
    %cst_7 = arith.constant 0.000000e+00 : f32
    %23 = vector.broadcast %cst_7 : f32 to vector<16x1xf32>
    %24 = arith.cmpf ogt, %20, %23 : vector<16x1xf32>
    %cst_8 = arith.constant 1.000000e+00 : f32
    %25 = vector.broadcast %cst_8 : f32 to vector<16x1xf32>
    %26 = arith.select %24, %20, %25 : vector<16x1xi1>, vector<16x1xf32>
    %27 = math.log %26 : vector<16x1xf32>
    %cst_9 = arith.constant 0.000000e+00 : f32
    %28 = vector.broadcast %cst_9 : f32 to vector<16x1xf32>
    %29 = arith.cmpf ogt, %22, %28 : vector<16x1xf32>
    %cst_10 = arith.constant 1.000000e+00 : f32
    %30 = vector.broadcast %cst_10 : f32 to vector<16x1xf32>
    %31 = arith.select %29, %22, %30 : vector<16x1xi1>, vector<16x1xf32>
    %32 = math.log %31 : vector<16x1xf32>
    %cst_11 = arith.constant 0.000000e+00 : f32
    %33 = vector.broadcast %cst_11 : f32 to vector<16x1xf32>
    %34 = arith.cmpf ogt, %20, %33 : vector<16x1xf32>
    %cst_12 = arith.constant -0.105360515 : f32
    %35 = vector.broadcast %cst_12 : f32 to vector<16x1xf32>
    %36 = arith.subf %35, %27 : vector<16x1xf32>
    %cst_13 = arith.constant 0.899999976 : f32
    %37 = vector.broadcast %cst_13 : f32 to vector<16x1xf32>
    %38 = arith.mulf %37, %36 : vector<16x1xf32>
    %cst_14 = arith.constant 0.000000e+00 : f32
    %39 = vector.broadcast %cst_14 : f32 to vector<16x1xf32>
    %40 = arith.select %34, %38, %39 : vector<16x1xi1>, vector<16x1xf32>
    %cst_15 = arith.constant 0.000000e+00 : f32
    %41 = vector.broadcast %cst_15 : f32 to vector<16x1xf32>
    %42 = arith.cmpf ogt, %22, %41 : vector<16x1xf32>
    %cst_16 = arith.constant -2.30258512 : f32
    %43 = vector.broadcast %cst_16 : f32 to vector<16x1xf32>
    %44 = arith.subf %43, %32 : vector<16x1xf32>
    %cst_17 = arith.constant 1.000000e-01 : f32
    %45 = vector.broadcast %cst_17 : f32 to vector<16x1xf32>
    %46 = arith.mulf %45, %44 : vector<16x1xf32>
    %cst_18 = arith.constant 0.000000e+00 : f32
    %47 = vector.broadcast %cst_18 : f32 to vector<16x1xf32>
    %48 = arith.select %42, %46, %47 : vector<16x1xi1>, vector<16x1xf32>
    %49 = arith.addf %40, %48 : vector<16x1xf32>
    %cst_19 = arith.constant 0.899999976 : f32
    %50 = vector.broadcast %cst_19 : f32 to vector<16x1xf32>
    %51 = arith.cmpf oge, %20, %50 : vector<16x1xf32>
    %cst_20 = arith.constant 0.000000e+00 : f32
    %52 = vector.broadcast %cst_20 : f32 to vector<16x1xf32>
    %53 = arith.select %51, %52, %49 : vector<16x1xi1>, vector<16x1xf32>
    %c1_i32 = arith.constant 1 : i32
    %54 = arith.muli %arg0, %c1_i32 : i32
    %55 = arith.addi %54, %arg1 : i32
    %c16_i32 = arith.constant 16 : i32
    %56 = arith.muli %55, %c16_i32 : i32
    %57 = tpu.iota {dimensions = array<i32: 0>} : vector<16x1xi32>
    %58 = vector.broadcast %56 : i32 to vector<16x1xi32>
    %59 = arith.addi %58, %57 : vector<16x1xi32>
    %c13_i32 = arith.constant 13 : i32
    %60 = vector.broadcast %c13_i32 : i32 to vector<16x1xi32>
    %61 = arith.cmpi slt, %59, %60 : vector<16x1xi32>
    %cst_21 = arith.constant 0.000000e+00 : f32
    %62 = vector.broadcast %cst_21 : f32 to vector<16x1xf32>
    %63 = arith.select %61, %53, %62 : vector<16x1xi1>, vector<16x1xf32>
    %c0_22 = arith.constant 0 : index
    %c0_23 = arith.constant 0 : index
    %64 = vector.load %arg5[%c0_22, %c0_23] : memref<1x1xf32, #tpu.memory_space<vmem>>, vector<1x1xf32>
    %65 = vector.shape_cast %63 : vector<16x1xf32> to vector<1x16x1xf32>
    %cst_24 = arith.constant dense<0.000000e+00> : vector<1xf32>
    %66 = vector.multi_reduction <add>, %65, %cst_24 [1, 2] : vector<1x16x1xf32> to vector<1xf32>
    %67 = vector.shape_cast %66 : vector<1xf32> to vector<1x1x1xf32>
    %68 = vector.extract %67[0, 0, 0] : f32 from vector<1x1x1xf32>
    %69 = vector.broadcast %68 : f32 to vector<1x1xf32>
    %70 = arith.addf %64, %69 : vector<1x1xf32>
    %c0_25 = arith.constant 0 : index
    %c0_26 = arith.constant 0 : index
    %71 = vector.load %arg5[%c0_25, %c0_26] : memref<1x1xf32, #tpu.memory_space<vmem>>, vector<1x1xf32>
    tpu.vector_store %arg5[%c0_25, %c0_26], %70 {strides = array<i32>} : memref<1x1xf32, #tpu.memory_space<vmem>>, vector<1x1xf32>,
    %c0_i32_27 = arith.constant 0 : i32
    %72 = arith.cmpi eq, %arg1, %c0_i32_27 : i32
    %73 = arith.extui %72 : i1 to i32
    %c0_i32_28 = arith.constant 0 : i32
    %74 = arith.cmpi ne, %73, %c0_i32_28 : i32
    scf.if %74 {
      %c0_29 = arith.constant 0 : index
      %c0_30 = arith.constant 0 : index
      %75 = vector.load %arg5[%c0_29, %c0_30] : memref<1x1xf32, #tpu.memory_space<vmem>>, vector<1x1xf32>
      %76 = vector.shape_cast %75 : vector<1x1xf32> to vector<1x1x1xf32>
      %77 = vector.shape_cast %76 : vector<1x1x1xf32> to vector<1x1x1xf32>
      %78 = vector.broadcast %77 : vector<1x1x1xf32> to vector<1x1x128xf32>
      %c0_31 = arith.constant 0 : index
      %c0_32 = arith.constant 0 : index
      %c0_33 = arith.constant 0 : index
      %79 = vector.load %arg4[%c0_31, %c0_32, %c0_33] : memref<1x1x128xf32, #tpu.memory_space<vmem>>, vector<1x1x128xf32>
      tpu.vector_store %arg4[%c0_31, %c0_32, %c0_33], %78 {strides = array<i32>} : memref<1x1x128xf32, #tpu.memory_space<vmem>>, vector<1x1x128xf32>,
    } else {
    }
    return
  }
  func.func @transform_0(%arg0: i32, %arg1: i32) -> (i32, i32) {
    %c1_i32 = arith.constant 1 : i32
    %0 = arith.muli %arg0, %c1_i32 : i32
    %1 = arith.addi %0, %arg1 : i32
    %c0_i32 = arith.constant 0 : i32
    %2 = arith.minsi %1, %c0_i32 : i32
    %c0_i32_0 = arith.constant 0 : i32
    %c0_i32_1 = arith.constant 0 : i32
    return %2, %c0_i32_0 : i32, i32
  }
  func.func @transform_1(%arg0: i32, %arg1: i32) -> (i32, i32) {
    %c1_i32 = arith.constant 1 : i32
    %0 = arith.muli %arg0, %c1_i32 : i32
    %1 = arith.addi %0, %arg1 : i32
    %c0_i32 = arith.constant 0 : i32
    %2 = arith.minsi %1, %c0_i32 : i32
    %c0_i32_0 = arith.constant 0 : i32
    %c0_i32_1 = arith.constant 0 : i32
    return %2, %c0_i32_0 : i32, i32
  }
  func.func @transform_2(%arg0: i32, %arg1: i32) -> (i32, i32, i32) {
    %c0_i32 = arith.constant 0 : i32
    %c0_i32_0 = arith.constant 0 : i32
    %c0_i32_1 = arith.constant 0 : i32
    return %arg0, %c0_i32, %c0_i32_0 : i32, i32, i32
  }
}

</mosaic_0001>

<bundles_post_ra>
// kernel: tpu_custom_call.1
= control target key start
LH: loop header
LB: loop body
LE: loop exit
PB: predicated region body
PF: predicated region fallthrough
CT: control target
= control target key end

     0   :  { %7 = vsyncpa [#allocation4], 0  ;;  %s371_s0 = inlined_call_operand.hbm [shape: f32[13,128], index: 0, kind: input, shape index: {}]   ;;  %s372_s1 = inlined_call_operand.hbm [shape: s32[13,1], index: 1, kind: input, shape index: {}]   ;;  %s373_s2 = inlined_call_operand.hbm [shape: f32[1,1,128], index: 2, kind: output, shape index: {}]  }
   0x1   :  { %8 = vsyncpa [#allocation7], 0 }
   0x2   :  { %9 = vsyncpa [#allocation5], 0  ;;  %s305_s9 = smov [#allocation3]   ;;  %s233_s13 = scalar_lea.hbm %s371_s0, 256 }
   0x3   :  { %s21_s10 = sshll.u32 %s305_s9, 4  ;;  %p234_p0 = scmp.ne.s32.totalorder %s371_s0, %s233_s13  ;;  %s22_s10 = int_to_ptr.vmem [resolvable:$true] %s21_s10 }
   0x4   :  { %p237_p1 = scmp.lt.u32.totalorder %s233_s13, %s371_s0 }
   0x6   :  { %p239_p2 = pnand %p237_p1, %p234_p0 }
   0x8   :  { %242 = shalt.err (!%p239_p2)
}
   0x9   :  { %s243_s18 = scalar_lea.vmem %s22_s10, 256  ;;  %p248_p4 = scmp.lt.s32.totalorder %s22_s10, %s22_s10 }
   0xa   :  { %p244_p3 = scmp.ne.s32.totalorder %s22_s10, %s243_s18  ;;  %p249_p5 = scmp.lt.s32.totalorder %s243_s18, %s243_s18 }
   0xc   :  { %p250_p6 = por %p249_p5, %p248_p4 }
   0xe   :  { %p251_p7 = pnand %p250_p6, %p244_p3 }
  0x10   :  { %254 = shalt.err (!%p251_p7)
}
  0x11   :  { %s306_s19 = smov 128   ;;  %s307_s20 = smov 8  }
  0x12   :  { %27 = dma.hbm_to_vmem [thread:$0]  %s371_s0, 256, %s22_s10, [#allocation4], %s306_s19, %s306_s19, %s307_s20  }
  0x13   :  { %s308_s23 = smov [#allocation6]   ;;  %s255_s27 = scalar_lea.hbm %s372_s1, 256 }
  0x14   :  { %s39_s24 = sshll.u32 %s308_s23, 4  ;;  %p256_p8 = scmp.ne.s32.totalorder %s372_s1, %s255_s27  ;;  %s40_s24 = int_to_ptr.vmem [resolvable:$true] %s39_s24 }
  0x15   :  { %p259_p9 = scmp.lt.u32.totalorder %s255_s27, %s372_s1 }
  0x17   :  { %p261_p10 = pnand %p259_p9, %p256_p8 }
  0x19   :  { %264 = shalt.err (!%p261_p10)
}
  0x1a   :  { %s265_s4 = scalar_lea.vmem %s40_s24, 256  ;;  %p270_p12 = scmp.lt.s32.totalorder %s40_s24, %s40_s24 }
  0x1b   :  { %p266_p11 = scmp.ne.s32.totalorder %s40_s24, %s265_s4  ;;  %p271_p13 = scmp.lt.s32.totalorder %s265_s4, %s265_s4 }
  0x1d   :  { %p272_p0 = por %p271_p13, %p270_p12 }
  0x1f   :  { %p273_p1 = pnand %p272_p0, %p266_p11 }
  0x21   :  { %276 = shalt.err (!%p273_p1)
}
  0x22   :  { %45 = dma.hbm_to_vmem [thread:$0]  %s372_s1, 256, %s40_s24, [#allocation7], %s306_s19, %s306_s19, %s307_s20  }
  0x23   :  { %299 = dma.done.wait [#allocation4], 256  }
  0x24   :  { %300 = vsyncadd [#allocation4], 4294967040 }
  0x25   :  { %301 = dma.done.wait [#allocation7], 256  }
  0x26   :  { %302 = vsyncadd [#allocation7], 4294967040  ;;  %v309_v0 = vmov 0   ;;  %v67_v1 = vld [vmem:[#allocation3 + $0x8] sm:$0xff]  ;;  %v69_v2 = vld [vmem:[#allocation6 + $0x8] sm:$0xff]  ;;  %v70_v11 = vlaneseq  ;;  %vm155_vm8 = vcmask 7168  }
  0x27   :  { %215 = vset.pattern.permute.xlu1 %v309_v0  ;;  %216 = vset.pattern.permute.xlu0 %v309_v0  ;;  %v66_v3 = vld [vmem:[#allocation3] sm:$0xff]  ;;  %v68_v4 = vld [vmem:[#allocation6] sm:$0xff]  ;;  %vm64_vm10 = vcmask 0   ;;  %s311_s6 = smov [#allocation8]  }
  0x28   :  { %82 = vmax.xlane.f32.xlu0 %v67_v1  ;;  %76 = vperm.xlu1 %215, %v69_v2   ;;  %v71_v13 = vand.u32 127, %v70_v11  ;;  %v145_v38 = vshrl.u32 %v70_v11, 7  ;;  %s192_s7 = sshll.u32 %s311_s6, 4  ;;  %s193_s7 = int_to_ptr.vmem [resolvable:$true] %s192_s7 }
  0x29   :  { %s277_s8 = scalar_lea.vmem %s193_s7, 16  ;;  %s281_s9 = scalar_lea.vmem %s193_s7, 32 }
  0x2a   :  { %v146_v48 = vadd.s32 8, %v145_v38  ;;  %p278_p2 = scmp.ne.s32.totalorder %s193_s7, %s277_s8  ;;  %p282_p3 = scmp.lt.s32.totalorder %s193_s7, %s193_s7 }
  0x2b   :  { %p283_p4 = scmp.lt.s32.totalorder %s281_s9, %s277_s8 }
  0x2c   :  { %80 = vmax.xlane.f32.xlu0 %v66_v3  ;;  %73 = vperm.xlu1 %215, %v68_v4   ;;  %vm151_vm7 = vcmp.lt.s32.totalorder %v146_v48, 13 }
  0x2d   :  { %p284_p5 = por %p283_p4, %p282_p3 }
  0x2f   :  { %p285_p6 = pnand %p284_p5, %p278_p2 }
  0xa7   :  { %v77_v12 = vpop.permute.xlu1 %76 }
  0xa8   :  { %vm79_vm0 = vcmp.eq.s32.totalorder %v71_v13, %v77_v12 }
  0xab   :  { %v74_v15 = vpop.permute.xlu1 %73 }
  0xac   :  { %vm78_vm1 = vcmp.eq.s32.totalorder %v71_v13, %v74_v15  ;;  %v183_v13 = vsub.s32 0, %v145_v38 }
  0xb5   :  { %v83_v5 = vpop.xlane.xlu0 %82 }
  0xb6   :  { %v85_v6 = vsub.f32 %v67_v1, %v83_v5  ;;  %v310_v1 = vmov 0.0  }
  0xb7   :  { %65 = vst.msk [vmem:[#allocation2] sm:$0x1] %vm64_vm10, %v310_v1 }
  0xb8   :  { %v88_v7 = vmul.f32 1.442695, %v85_v6 }
  0xb9   :  { %v81_v8 = vpop.xlane.xlu0 %80 }
  0xba   :  { %217 = vpow2.f32 %v88_v7  ;;  %v84_v9 = vsub.f32 %v66_v3, %v81_v8 }
  0xbc   :  { %v86_v10 = vmul.f32 1.442695, %v84_v9 }
  0xbe   :  { %219 = vpow2.f32 %v86_v10  ;;  %v154_v9 = vld [vmem:[#allocation2] sm:$0x1] }
  0xc4   :  { %v218_v14 = vpop.eup %217 }
  0xc5   :  { %92 = vadd.xlane.f32.xlu0 %v218_v14  ;;  %v95_v17 = vsel %vm79_vm0, %v218_v14, 0.0 }
  0xc8   :  { %v220_v16 = vpop.eup %219 }
  0xc9   :  { %98 = vadd.xlane.f32.xlu0 %v95_v17  ;;  %90 = vadd.xlane.f32.xlu1 %v220_v16  ;;  %v94_v18 = vsel %vm78_vm1, %v220_v16, 0.0 }
  0xcd   :  { %96 = vadd.xlane.f32.xlu0 %v94_v18 }
 0x152   :  { %v93_v19 = vpop.xlane.xlu0 %92 }
 0x153   :  { %221 = vrcp.f32 %v93_v19 }
 0x156   :  { %v91_v20 = vpop.xlane.xlu1 %90  ;;  %v99_v21 = vpop.xlane.xlu0 %98 }
 0x157   :  { %223 = vrcp.f32 %v91_v20  ;;  %v105_v22 = vsub.f32 %v93_v19, %v99_v21 }
 0x15a   :  { %v97_v24 = vpop.xlane.xlu0 %96 }
 0x15b   :  { %v104_v27 = vsub.f32 %v91_v20, %v97_v24 }
 0x15d   :  { %v222_v23 = vpop.eup %221 }
 0x15e   :  { %v103_v25 = vmul.f32 %v222_v23, %v99_v21  ;;  %v107_v26 = vmul.f32 %v222_v23, %v105_v22 }
 0x160   :  { %vm109_vm2 = vcmp.gt.f32.partialorder %v103_v25, 0.0  ;;  %vm117_vm3 = vcmp.gt.f32.partialorder %v107_v26, 0.0  ;;  %vm139_vm6 = vcmp.ge.f32.partialorder %v103_v25, 0.9 }
 0x161   :  { %v224_v28 = vpop.eup %223  ;;  %v111_v29 = vsel %vm109_vm2, %v103_v25, 1.0  ;;  %v119_v30 = vsel %vm117_vm3, %v107_v26, 1.0 }
 0x162   :  { %225 = vlog2.f32 %v111_v29  ;;  %v102_v31 = vmul.f32 %v224_v28, %v97_v24  ;;  %v106_v32 = vmul.f32 %v224_v28, %v104_v27 }
 0x163   :  { %227 = vlog2.f32 %v119_v30 }
 0x164   :  { %vm108_vm4 = vcmp.gt.f32.partialorder %v102_v31, 0.0  ;;  %vm116_vm5 = vcmp.gt.f32.partialorder %v106_v32, 0.0  ;;  %vm138_vm9 = vcmp.ge.f32.partialorder %v102_v31, 0.9 }
 0x165   :  { %v110_v33 = vsel %vm108_vm4, %v102_v31, 1.0  ;;  %v118_v34 = vsel %vm116_vm5, %v106_v32, 1.0 }
 0x166   :  { %229 = vlog2.f32 %v110_v33 }
 0x167   :  { %231 = vlog2.f32 %v118_v34 }
 0x16c   :  { %v226_v35 = vpop.eup %225 }
 0x16d   :  { %v228_v36 = vpop.eup %227  ;;  %v115_v37 = vmul.f32 0.6931472, %v226_v35 }
 0x16e   :  { %v123_v39 = vmul.f32 0.6931472, %v228_v36 }
 0x16f   :  { %v125_v40 = vsub.f32 -0.105360515, %v115_v37 }
 0x170   :  { %v230_v41 = vpop.eup %229  ;;  %v131_v42 = vsub.f32 -2.3025851, %v123_v39 }
 0x171   :  { %v232_v43 = vpop.eup %231  ;;  %v127_v44 = vmul.f32 0.9, %v125_v40  ;;  %v113_v45 = vmul.f32 0.6931472, %v230_v41 }
 0x172   :  { %v133_v46 = vmul.f32 0.1, %v131_v42  ;;  %v121_v47 = vmul.f32 0.6931472, %v232_v43 }
 0x173   :  { %v129_v49 = vsel %vm109_vm2, %v127_v44, 0.0  ;;  %v124_v50 = vsub.f32 -0.105360515, %v113_v45 }
 0x174   :  { %v135_v51 = vsel %vm117_vm3, %v133_v46, 0.0  ;;  %v130_v52 = vsub.f32 -2.3025851, %v121_v47 }
 0x175   :  { %v126_v53 = vmul.f32 0.9, %v124_v50  ;;  %v137_v54 = vadd.f32 %v135_v51, %v129_v49 }
 0x176   :  { %v132_v55 = vmul.f32 0.1, %v130_v52 }
 0x177   :  { %v128_v56 = vsel %vm108_vm4, %v126_v53, 0.0  ;;  %v141_v57 = vsel %vm139_vm6, 0.0, %v137_v54 }
 0x178   :  { %v134_v58 = vsel %vm116_vm5, %v132_v55, 0.0  ;;  %v153_v60 = vsel %vm151_vm7, %v141_v57, 0.0 }
 0x179   :  { %v136_v59 = vadd.f32 %v134_v58, %v128_v56  ;;  %v157_v63 = vsel %vm155_vm8, %v153_v60, 0.0 }
 0x17b   :  { %v140_v61 = vsel %vm138_vm9, 0.0, %v136_v59 }
 0x17c   :  { %v156_v62 = vsel %vm155_vm8, %v140_v61, 0.0 }
 0x17d   :  { %v158_v0 = vadd.f32 %v157_v63, %v156_v62 }
 0x17f   :  { %159 = vadd.xlane.f32.xlu0 %v158_v0 }
 0x20c   :  { %v160_v2 = vpop.xlane.xlu0 %159 }
 0x20d   :  { %v161_v3 = vrot.slane %v160_v2, 4 }
 0x20f   :  { %v162_v4 = vadd.f32 %v161_v3, %v160_v2 }
 0x211   :  { %v163_v5 = vrot.slane %v162_v4, 2 }
 0x213   :  { %v164_v6 = vadd.f32 %v163_v5, %v162_v4 }
 0x215   :  { %v165_v7 = vrot.slane %v164_v6, 1 }
 0x217   :  { %v166_v8 = vadd.f32 %v165_v7, %v164_v6 }
 0x219   :  { %206 = vpush %v166_v8 }
 0x24a   :  { %s207_s1 = spop %206 }
 0x24b   :  { %v168_v10 = vstv %s207_s1 }
 0x24c   :  { %v169_v11 = vadd.f32 %v168_v10, %v154_v9 }
 0x24e   :  { %171 = vst.msk [vmem:[#allocation2] sm:$0x1] %vm64_vm10, %v169_v11 }
 0x255   :  { %v175_v12 = vld [vmem:[#allocation2] sm:$0x1] }
 0x256   :  { %178 = vperm.xlu0 %216, %v175_v12  }
 0x2d5   :  { %v179_v14 = vpop.permute.xlu0 %178 }
 0x2d6   :  { %v184_v15 = vrot.slane %v179_v14, %v183_v13 }
 0x2d8   :  { %185 = vst [vmem:[#allocation8] sm:$0x1] %v184_v15 }
 0x2d9   :  { %288 = shalt.err (!%p285_p6)
}
 0x2da   :  { %s289_s12 = scalar_lea.hbm %s373_s2, 16 }
 0x2db   :  { %p290_p7 = scmp.ne.s32.totalorder %s373_s2, %s289_s12  ;;  %p293_p8 = scmp.lt.u32.totalorder %s289_s12, %s373_s2 }
 0x2dd   :  { %p295_p9 = pnand %p293_p8, %p290_p7 }
 0x2df   :  { %298 = shalt.err (!%p295_p9)
}
 0x2e0   :  { %195 = dma.vmem_to_hbm [thread:$0]  %s193_s7, 16, %s373_s2, [#allocation5]  }
 0x2e1   :  { %303 = dma.done.wait [#allocation5], 16  }
 0x2e2   :  { %304 = vsyncadd [#allocation5], 4294967280 }
 0x2e3   :  { %199 = vsyncpa [#allocation4], 1 }
 0x2e4   :  { %200 = vsyncpa [#allocation7], 1 }
 0x2e5   :  { %201 = vsyncpa [#allocation5], 1 }

</bundles_post_ra>
